<compile_context>
chip_gen: v5e
topology: v5e:2x2
jax: 0.10.0
libtpu: 0.0.40
codegen_flags: <defaults>
</compile_context>

<pallas_src>
import jax
import jax.numpy as jnp
from jax.experimental import pallas as pl
from jax.experimental.pallas import tpu as pltpu

IMAGE_SIZE = 16
N_IN = IMAGE_SIZE * IMAGE_SIZE   # 256
WIDTH = 16                       # true hidden width of the PyTorch module
DEPTH = 4
N_CLASSES = 10

WIDTH_PAD = 128                  # hidden width zero-padded to one lane tile
OUT_PAD = 128                    # logits zero-padded so the output store is lane-dense


def _round_up(x, m):
    return ((x + m - 1) // m) * m


def _mlp_kernel(x_ref,
                w1_ref, b1_ref,
                w2_ref, b2_ref,
                w3_ref, b3_ref,
                w4_ref, b4_ref,
                wc_ref, bc_ref,
                o_ref):
    """Fused forward for one batch tile: 4x (Linear + ReLU) then classifier Linear.

    Matmuls run in bf16 on the MXU with f32 accumulation; bias add + ReLU stay f32.
    """
    h = x_ref[...]                                          # (TB, 256) bf16
    for w_ref, b_ref in ((w1_ref, b1_ref), (w2_ref, b2_ref),
                         (w3_ref, b3_ref), (w4_ref, b4_ref)):
        a = jnp.dot(h, w_ref[...], preferred_element_type=jnp.float32)
        a = a + b_ref[...]                                  # f32 bias broadcast
        h = jnp.maximum(a, 0.0).astype(jnp.bfloat16)        # bf16 for next MXU op
    # classifier head (no activation); (TB, 128) f32 lane-dense store
    o_ref[...] = (jnp.dot(h, wc_ref[...], preferred_element_type=jnp.float32)
                  + bc_ref[...])


def mlp_forward(x, params, *, tb=512):
    """x: (B, 1, H, W) or (B, n_in).  params: zero-padded f32 weights/biases.

    Returns (B, 10) f32 logits, matching the PyTorch MLP.forward semantics.
    """
    x2 = x.reshape(-1, N_IN)                 # glue: x.view(-1, n_in)
    B = x2.shape[0]

    # Batch tile: multiple of 16 (bf16 sublane packing), capped at `tb` (default 512).
    TB = min(tb, _round_up(B, 16))
    B_pad = _round_up(B, TB)
    if B_pad != B:
        x2 = jnp.pad(x2, ((0, B_pad - B), (0, 0)))
    x2 = x2.astype(jnp.bfloat16)

    def w(name):
        return params["w" + name].astype(jnp.bfloat16)

    def b(name):
        return params["b" + name].astype(jnp.float32)

    args = (
        x2,
        w("1"), b("1"),
        w("2"), b("2"),
        w("3"), b("3"),
        w("4"), b("4"),
        w("c"), b("c"),
    )

    def resident(shape):
        # Constant block index -> stays resident in VMEM across all grid steps.
        return pl.BlockSpec(shape, lambda i: (0, 0))

    in_specs = [
        pl.BlockSpec((TB, N_IN), lambda i: (i, 0)),               # x: batch-tiled
        resident((N_IN, WIDTH_PAD)),      resident((1, WIDTH_PAD)),   # layer 1
        resident((WIDTH_PAD, WIDTH_PAD)), resident((1, WIDTH_PAD)),   # layer 2
        resident((WIDTH_PAD, WIDTH_PAD)), resident((1, WIDTH_PAD)),   # layer 3
        resident((WIDTH_PAD, WIDTH_PAD)), resident((1, WIDTH_PAD)),   # layer 4
        resident((WIDTH_PAD, OUT_PAD)),   resident((1, OUT_PAD)),     # classifier
    ]
    out_spec = pl.BlockSpec((TB, OUT_PAD), lambda i: (i, 0))

    out_pad = pl.pallas_call(
        _mlp_kernel,
        out_shape=jax.ShapeDtypeStruct((B_pad, OUT_PAD), jnp.float32),
        grid=(B_pad // TB,),
        in_specs=in_specs,
        out_specs=out_spec,
        compiler_params=pltpu.CompilerParams(
            dimension_semantics=("parallel",),   # shard batch tiles across TCs (v7x)
        ),
    )(*args)

    return out_pad[:B, :N_CLASSES]


def init_mlp_params(key):
    """Matches the PyTorch init:
       kaiming_normal_(fan_in, relu) -> std = sqrt(2 / fan_in) for weights,
       normal(std=1e-6) for biases.
       Weights stored pre-transposed as (in_features, out_features) and zero-padded
       to lane-dense shapes; padding is exact (zeros), so semantics are unchanged."""
    specs = [
        # name, fan_in, fan_out, padded_in, padded_out
        ("1", N_IN,  WIDTH,     N_IN,      WIDTH_PAD),
        ("2", WIDTH, WIDTH,     WIDTH_PAD, WIDTH_PAD),
        ("3", WIDTH, WIDTH,     WIDTH_PAD, WIDTH_PAD),
        ("4", WIDTH, WIDTH,     WIDTH_PAD, WIDTH_PAD),
        ("c", WIDTH, N_CLASSES, WIDTH_PAD, OUT_PAD),
    ]
    params = {}
    for name, fan_in, fan_out, in_pad, out_pad in specs:
        key, kw, kb = jax.random.split(key, 3)
        std_w = (2.0 / fan_in) ** 0.5
        # draw in (out, in) like torch then transpose -> identical distribution
        w_true = (jax.random.normal(kw, (fan_out, fan_in), jnp.float32) * std_w).T
        b_true = jax.random.normal(kb, (fan_out,), jnp.float32) * 1e-6
        w = jnp.zeros((in_pad, out_pad), jnp.float32).at[:fan_in, :fan_out].set(w_true)
        b = jnp.zeros((1, out_pad), jnp.float32).at[0, :fan_out].set(b_true)
        params["w" + name] = w
        params["b" + name] = b
    return params


if __name__ == "__main__":
    key = jax.random.PRNGKey(0)
    k_params, k_x = jax.random.split(key)

    params = init_mlp_params(k_params)
    # batch=2, single-channel 16x16 "image" input (flattened inside forward)
    x = jax.random.normal(k_x, (2, 1, IMAGE_SIZE, IMAGE_SIZE), jnp.float32)

    out = jax.block_until_ready(mlp_forward(x, params))
    assert out.shape == (2, N_CLASSES) and out.dtype == jnp.float32

    # f32 reference in plain JAX (zero padding is exact, so padded params match).
    h = x.reshape(-1, N_IN)
    for n in ["1", "2", "3", "4"]:
        h = jnp.maximum(h @ params["w" + n] + params["b" + n], 0.0)
    ref = (h @ params["wc"] + params["bc"])[:, :N_CLASSES]
    # bf16 matmuls with f32 accumulation -> relaxed tolerance vs pure-f32 reference.
    assert jnp.allclose(out, ref, atol=5e-2, rtol=5e-2), \
        float(jnp.max(jnp.abs(out - ref)))

    print("KERNEL_OK")
</pallas_src>

<mosaic_0001>
module attributes {stable_mosaic.version = 11 : i64} {
  func.func @_mlp_kernel(%arg0: i32, %arg1: memref<16x256xbf16, #tpu.memory_space<vmem>>, %arg2: memref<256x128xbf16, #tpu.memory_space<vmem>>, %arg3: memref<1x128xf32, #tpu.memory_space<vmem>>, %arg4: memref<128x128xbf16, #tpu.memory_space<vmem>>, %arg5: memref<1x128xf32, #tpu.memory_space<vmem>>, %arg6: memref<128x128xbf16, #tpu.memory_space<vmem>>, %arg7: memref<1x128xf32, #tpu.memory_space<vmem>>, %arg8: memref<128x128xbf16, #tpu.memory_space<vmem>>, %arg9: memref<1x128xf32, #tpu.memory_space<vmem>>, %arg10: memref<128x128xbf16, #tpu.memory_space<vmem>>, %arg11: memref<1x128xf32, #tpu.memory_space<vmem>>, %arg12: memref<16x128xf32, #tpu.memory_space<vmem>>) attributes {dimension_semantics = [#tpu.dimension_semantics<parallel>], iteration_bounds = array<i64: 1>, scalar_prefetch = 0 : i64, scratch_operands = 0 : i64, tpu.core_type = #tpu.core_type<tc>, window_params = [{transform_indices = @transform_0, window_bounds = array<i64: 16, 256>}, {pipeline_mode = #tpu.pipeline_mode<synchronous>, transform_indices = @transform_1, window_bounds = array<i64: 256, 128>}, {pipeline_mode = #tpu.pipeline_mode<synchronous>, transform_indices = @transform_2, window_bounds = array<i64: 1, 128>}, {pipeline_mode = #tpu.pipeline_mode<synchronous>, transform_indices = @transform_3, window_bounds = array<i64: 128, 128>}, {pipeline_mode = #tpu.pipeline_mode<synchronous>, transform_indices = @transform_4, window_bounds = array<i64: 1, 128>}, {pipeline_mode = #tpu.pipeline_mode<synchronous>, transform_indices = @transform_5, window_bounds = array<i64: 128, 128>}, {pipeline_mode = #tpu.pipeline_mode<synchronous>, transform_indices = @transform_6, window_bounds = array<i64: 1, 128>}, {pipeline_mode = #tpu.pipeline_mode<synchronous>, transform_indices = @transform_7, window_bounds = array<i64: 128, 128>}, {pipeline_mode = #tpu.pipeline_mode<synchronous>, transform_indices = @transform_8, window_bounds = array<i64: 1, 128>}, {pipeline_mode = #tpu.pipeline_mode<synchronous>, transform_indices = @transform_9, window_bounds = array<i64: 128, 128>}, {pipeline_mode = #tpu.pipeline_mode<synchronous>, transform_indices = @transform_10, window_bounds = array<i64: 1, 128>}, {transform_indices = @transform_11, window_bounds = array<i64: 16, 128>}]} {
    %c0 = arith.constant 0 : index
    %c0_0 = arith.constant 0 : index
    %0 = vector.load %arg1[%c0, %c0_0] : memref<16x256xbf16, #tpu.memory_space<vmem>>, vector<16x256xbf16>
    %c0_1 = arith.constant 0 : index
    %c0_2 = arith.constant 0 : index
    %1 = vector.load %arg2[%c0_1, %c0_2] : memref<256x128xbf16, #tpu.memory_space<vmem>>, vector<256x128xbf16>
    %cst = arith.constant dense<0.000000e+00> : vector<16x128xf32>
    %2 = tpu.matmul %0, %1, %cst {dimension_numbers = #tpu.dot_dimension_numbers<[1], [0], [0], [1], [0, 0, 1, 1], [], []>} : vector<16x256xbf16>, vector<256x128xbf16>, vector<16x128xf32> -> vector<16x128xf32>
    %c0_3 = arith.constant 0 : index
    %c0_4 = arith.constant 0 : index
    %3 = vector.load %arg3[%c0_3, %c0_4] : memref<1x128xf32, #tpu.memory_space<vmem>>, vector<1x128xf32>
    %4 = vector.broadcast %3 : vector<1x128xf32> to vector<16x128xf32>
    %5 = arith.addf %2, %4 : vector<16x128xf32>
    %cst_5 = arith.constant 0.000000e+00 : f32
    %6 = vector.broadcast %cst_5 : f32 to vector<16x128xf32>
    %7 = arith.maximumf %5, %6 : vector<16x128xf32>
    %8 = arith.truncf %7 : vector<16x128xf32> to vector<16x128xbf16>
    %c0_6 = arith.constant 0 : index
    %c0_7 = arith.constant 0 : index
    %9 = vector.load %arg4[%c0_6, %c0_7] : memref<128x128xbf16, #tpu.memory_space<vmem>>, vector<128x128xbf16>
    %cst_8 = arith.constant dense<0.000000e+00> : vector<16x128xf32>
    %10 = tpu.matmul %8, %9, %cst_8 {dimension_numbers = #tpu.dot_dimension_numbers<[1], [0], [0], [1], [0, 0, 1, 1], [], []>} : vector<16x128xbf16>, vector<128x128xbf16>, vector<16x128xf32> -> vector<16x128xf32>
    %c0_9 = arith.constant 0 : index
    %c0_10 = arith.constant 0 : index
    %11 = vector.load %arg5[%c0_9, %c0_10] : memref<1x128xf32, #tpu.memory_space<vmem>>, vector<1x128xf32>
    %12 = vector.broadcast %11 : vector<1x128xf32> to vector<16x128xf32>
    %13 = arith.addf %10, %12 : vector<16x128xf32>
    %cst_11 = arith.constant 0.000000e+00 : f32
    %14 = vector.broadcast %cst_11 : f32 to vector<16x128xf32>
    %15 = arith.maximumf %13, %14 : vector<16x128xf32>
    %16 = arith.truncf %15 : vector<16x128xf32> to vector<16x128xbf16>
    %c0_12 = arith.constant 0 : index
    %c0_13 = arith.constant 0 : index
    %17 = vector.load %arg6[%c0_12, %c0_13] : memref<128x128xbf16, #tpu.memory_space<vmem>>, vector<128x128xbf16>
    %cst_14 = arith.constant dense<0.000000e+00> : vector<16x128xf32>
    %18 = tpu.matmul %16, %17, %cst_14 {dimension_numbers = #tpu.dot_dimension_numbers<[1], [0], [0], [1], [0, 0, 1, 1], [], []>} : vector<16x128xbf16>, vector<128x128xbf16>, vector<16x128xf32> -> vector<16x128xf32>
    %c0_15 = arith.constant 0 : index
    %c0_16 = arith.constant 0 : index
    %19 = vector.load %arg7[%c0_15, %c0_16] : memref<1x128xf32, #tpu.memory_space<vmem>>, vector<1x128xf32>
    %20 = vector.broadcast %19 : vector<1x128xf32> to vector<16x128xf32>
    %21 = arith.addf %18, %20 : vector<16x128xf32>
    %cst_17 = arith.constant 0.000000e+00 : f32
    %22 = vector.broadcast %cst_17 : f32 to vector<16x128xf32>
    %23 = arith.maximumf %21, %22 : vector<16x128xf32>
    %24 = arith.truncf %23 : vector<16x128xf32> to vector<16x128xbf16>
    %c0_18 = arith.constant 0 : index
    %c0_19 = arith.constant 0 : index
    %25 = vector.load %arg8[%c0_18, %c0_19] : memref<128x128xbf16, #tpu.memory_space<vmem>>, vector<128x128xbf16>
    %cst_20 = arith.constant dense<0.000000e+00> : vector<16x128xf32>
    %26 = tpu.matmul %24, %25, %cst_20 {dimension_numbers = #tpu.dot_dimension_numbers<[1], [0], [0], [1], [0, 0, 1, 1], [], []>} : vector<16x128xbf16>, vector<128x128xbf16>, vector<16x128xf32> -> vector<16x128xf32>
    %c0_21 = arith.constant 0 : index
    %c0_22 = arith.constant 0 : index
    %27 = vector.load %arg9[%c0_21, %c0_22] : memref<1x128xf32, #tpu.memory_space<vmem>>, vector<1x128xf32>
    %28 = vector.broadcast %27 : vector<1x128xf32> to vector<16x128xf32>
    %29 = arith.addf %26, %28 : vector<16x128xf32>
    %cst_23 = arith.constant 0.000000e+00 : f32
    %30 = vector.broadcast %cst_23 : f32 to vector<16x128xf32>
    %31 = arith.maximumf %29, %30 : vector<16x128xf32>
    %32 = arith.truncf %31 : vector<16x128xf32> to vector<16x128xbf16>
    %c0_24 = arith.constant 0 : index
    %c0_25 = arith.constant 0 : index
    %33 = vector.load %arg10[%c0_24, %c0_25] : memref<128x128xbf16, #tpu.memory_space<vmem>>, vector<128x128xbf16>
    %cst_26 = arith.constant dense<0.000000e+00> : vector<16x128xf32>
    %34 = tpu.matmul %32, %33, %cst_26 {dimension_numbers = #tpu.dot_dimension_numbers<[1], [0], [0], [1], [0, 0, 1, 1], [], []>} : vector<16x128xbf16>, vector<128x128xbf16>, vector<16x128xf32> -> vector<16x128xf32>
    %c0_27 = arith.constant 0 : index
    %c0_28 = arith.constant 0 : index
    %35 = vector.load %arg11[%c0_27, %c0_28] : memref<1x128xf32, #tpu.memory_space<vmem>>, vector<1x128xf32>
    %36 = vector.broadcast %35 : vector<1x128xf32> to vector<16x128xf32>
    %37 = arith.addf %34, %36 : vector<16x128xf32>
    %c0_29 = arith.constant 0 : index
    %c0_30 = arith.constant 0 : index
    %38 = vector.load %arg12[%c0_29, %c0_30] : memref<16x128xf32, #tpu.memory_space<vmem>>, vector<16x128xf32>
    tpu.vector_store %arg12[%c0_29, %c0_30], %37 {strides = array<i32>} : memref<16x128xf32, #tpu.memory_space<vmem>>, vector<16x128xf32>,
    return
  }
  func.func @transform_0(%arg0: i32) -> (i32, i32) {
    %c0_i32 = arith.constant 0 : i32
    %c0_i32_0 = arith.constant 0 : i32
    return %arg0, %c0_i32 : i32, i32
  }
  func.func @transform_1(%arg0: i32) -> (i32, i32) {
    %c0_i32 = arith.constant 0 : i32
    %c0_i32_0 = arith.constant 0 : i32
    %c0_i32_1 = arith.constant 0 : i32
    return %c0_i32, %c0_i32_0 : i32, i32
  }
  func.func @transform_2(%arg0: i32) -> (i32, i32) {
    %c0_i32 = arith.constant 0 : i32
    %c0_i32_0 = arith.constant 0 : i32
    %c0_i32_1 = arith.constant 0 : i32
    return %c0_i32, %c0_i32_0 : i32, i32
  }
  func.func @transform_3(%arg0: i32) -> (i32, i32) {
    %c0_i32 = arith.constant 0 : i32
    %c0_i32_0 = arith.constant 0 : i32
    %c0_i32_1 = arith.constant 0 : i32
    return %c0_i32, %c0_i32_0 : i32, i32
  }
  func.func @transform_4(%arg0: i32) -> (i32, i32) {
    %c0_i32 = arith.constant 0 : i32
    %c0_i32_0 = arith.constant 0 : i32
    %c0_i32_1 = arith.constant 0 : i32
    return %c0_i32, %c0_i32_0 : i32, i32
  }
  func.func @transform_5(%arg0: i32) -> (i32, i32) {
    %c0_i32 = arith.constant 0 : i32
    %c0_i32_0 = arith.constant 0 : i32
    %c0_i32_1 = arith.constant 0 : i32
    return %c0_i32, %c0_i32_0 : i32, i32
  }
  func.func @transform_6(%arg0: i32) -> (i32, i32) {
    %c0_i32 = arith.constant 0 : i32
    %c0_i32_0 = arith.constant 0 : i32
    %c0_i32_1 = arith.constant 0 : i32
    return %c0_i32, %c0_i32_0 : i32, i32
  }
  func.func @transform_7(%arg0: i32) -> (i32, i32) {
    %c0_i32 = arith.constant 0 : i32
    %c0_i32_0 = arith.constant 0 : i32
    %c0_i32_1 = arith.constant 0 : i32
    return %c0_i32, %c0_i32_0 : i32, i32
  }
  func.func @transform_8(%arg0: i32) -> (i32, i32) {
    %c0_i32 = arith.constant 0 : i32
    %c0_i32_0 = arith.constant 0 : i32
    %c0_i32_1 = arith.constant 0 : i32
    return %c0_i32, %c0_i32_0 : i32, i32
  }
  func.func @transform_9(%arg0: i32) -> (i32, i32) {
    %c0_i32 = arith.constant 0 : i32
    %c0_i32_0 = arith.constant 0 : i32
    %c0_i32_1 = arith.constant 0 : i32
    return %c0_i32, %c0_i32_0 : i32, i32
  }
  func.func @transform_10(%arg0: i32) -> (i32, i32) {
    %c0_i32 = arith.constant 0 : i32
    %c0_i32_0 = arith.constant 0 : i32
    %c0_i32_1 = arith.constant 0 : i32
    return %c0_i32, %c0_i32_0 : i32, i32
  }
  func.func @transform_11(%arg0: i32) -> (i32, i32) {
    %c0_i32 = arith.constant 0 : i32
    %c0_i32_0 = arith.constant 0 : i32
    return %arg0, %c0_i32 : i32, i32
  }
}

</mosaic_0001>

<bundles_post_ra>
// kernel: tpu_custom_call.1
= control target key start
LH: loop header
LB: loop body
LE: loop exit
PB: predicated region body
PF: predicated region fallthrough
CT: control target
= control target key end

     0   :  { %16 = vsyncpa [#allocation3], 0  ;;  %s1241_s0 = inlined_call_operand.hbm [shape: bf16[16,256], index: 0, kind: input, shape index: {}]   ;;  %s1242_s1 = inlined_call_operand.hbm [shape: bf16[256,128], index: 1, kind: input, shape index: {}]   ;;  %s1243_s2 = inlined_call_operand.vmem [shape: f32[1,128], index: 2, kind: input, shape index: {}]   ;;  %s1244_s3 = inlined_call_operand.hbm [shape: bf16[128,128], index: 3, kind: input, shape index: {}]   ;;  %s1245_s4 = inlined_call_operand.vmem [shape: f32[1,128], index: 4, kind: input, shape index: {}]   ;;  %s1246_s5 = inlined_call_operand.hbm [shape: bf16[128,128], index: 5, kind: input, shape index: {}]   ;;  %s1247_s6 = inlined_call_operand.vmem [shape: f32[1,128], index: 6, kind: input, shape index: {}]   ;;  %s1248_s7 = inlined_call_operand.hbm [shape: bf16[128,128], index: 7, kind: input, shape index: {}]   ;;  %s1249_s8 = inlined_call_operand.vmem [shape: f32[1,128], index: 8, kind: input, shape index: {}]   ;;  %s1250_s9 = inlined_call_operand.hbm [shape: bf16[128,128], index: 9, kind: input, shape index: {}]   ;;  %s1251_s10 = inlined_call_operand.vmem [shape: f32[1,128], index: 10, kind: input, shape index: {}]   ;;  %s1252_s11 = inlined_call_operand.hbm [shape: f32[16,128], index: 11, kind: output, shape index: {}]  }
   0x1   :  { %17 = vsyncpa [#allocation6], 0 }
   0x2   :  { %18 = vsyncpa [#allocation9], 0 }
   0x3   :  { %19 = vsyncpa [#allocation12], 0  ;;  %s38_s19 = sshll.u32 %s1242_s1, 4  ;;  %s39_s19 = int_to_ptr.hbm [resolvable:$true] %s38_s19 }
   0x4   :  { %20 = vsyncpa [#allocation4], 0  ;;  %s1113_s20 = smov [#allocation5]   ;;  %s68_s24 = sshll.u32 %s1246_s5, 4  ;;  %s69_s24 = int_to_ptr.hbm [resolvable:$true] %s68_s24 }
   0x5   :  { %s40_s21 = sshll.u32 %s1113_s20, 4  ;;  %s1114_s25 = smov 64   ;;  %s41_s21 = int_to_ptr.vmem [resolvable:$true] %s40_s21 }
   0x6   :  { %s1115_s26 = smov 4   ;;  %s1116_s27 = smov [#allocation8]  }
   0x7   :  { %46 = dma.hbm_to_vmem [thread:$0]  %s39_s19, 2048, %s41_s21, [#allocation6], %s1114_s25, %s1114_s25, %s1115_s26  }
   0x8   :  { %s70_s28 = sshll.u32 %s1116_s27, 4  ;;  %s25_s30 = sshll.u32 %s1241_s0, 4  ;;  %s71_s28 = int_to_ptr.vmem [resolvable:$true] %s70_s28  ;;  %s26_s30 = int_to_ptr.hbm [resolvable:$true] %s25_s30 }
   0x9   :  { %76 = dma.hbm_to_vmem [thread:$0]  %s69_s24, 1024, %s71_s28, [#allocation9], %s1114_s25, %s1114_s25, %s1115_s26  }
   0xa   :  { %s1117_s5 = smov [#allocation2]   ;;  %s53_s15 = sshll.u32 %s1244_s3, 4  ;;  %s54_s15 = int_to_ptr.hbm [resolvable:$true] %s53_s15 }
   0xb   :  { %s27_s12 = sshll.u32 %s1117_s5, 4  ;;  %s1118_s16 = smov 128   ;;  %s28_s12 = int_to_ptr.vmem [resolvable:$true] %s27_s12 }
   0xc   :  { %s1119_s17 = smov 8   ;;  %s1120_s0 = smov [#allocation7]  }
   0xd   :  { %33 = dma.hbm_to_vmem [thread:$0]  %s26_s30, 256, %s28_s12, [#allocation3], %s1118_s16, %s1118_s16, %s1119_s17  }
   0xe   :  { %s55_s18 = sshll.u32 %s1120_s0, 4  ;;  %s83_s21 = sshll.u32 %s1248_s7, 4  ;;  %s56_s18 = int_to_ptr.vmem [resolvable:$true] %s55_s18  ;;  %s84_s21 = int_to_ptr.hbm [resolvable:$true] %s83_s21 }
   0xf   :  { %61 = dma.hbm_to_vmem [thread:$0]  %s54_s15, 1024, %s56_s18, [#allocation6], %s1114_s25, %s1114_s25, %s1115_s26  }
  0x10   :  { %s98_s23 = sshll.u32 %s1250_s9, 4  ;;  %s1121_s24 = smov [#allocation10]   ;;  %s99_s23 = int_to_ptr.hbm [resolvable:$true] %s98_s23 }
  0x11   :  { %s85_s27 = sshll.u32 %s1121_s24, 4  ;;  %s1122_s28 = smov [#allocation11]   ;;  %s86_s27 = int_to_ptr.vmem [resolvable:$true] %s85_s27 }
  0x12   :  { %91 = dma.hbm_to_vmem [thread:$0]  %s84_s21, 1024, %s86_s27, [#allocation9], %s1114_s25, %s1114_s25, %s1115_s26  }
  0x13   :  { %s100_s7 = sshll.u32 %s1122_s28, 4  ;;  %s101_s7 = int_to_ptr.vmem [resolvable:$true] %s100_s7 }
  0x14   :  { %106 = dma.hbm_to_vmem [thread:$0]  %s99_s23, 1024, %s101_s7, [#allocation12], %s1114_s25, %s1114_s25, %s1115_s26  }
  0x15   :  { %1103 = dma.done.wait [#allocation3], 256  }
  0x16   :  { %1104 = vsyncadd [#allocation3], 4294967040 }
  0x17   :  { %1105 = dma.done.wait [#allocation6], 3072  }
  0x18   :  { %1106 = vsyncadd [#allocation6], 4294964224 }
  0x19   :  { %1107 = dma.done.wait [#allocation9], 2048  }
  0x1a   :  { %1108 = vsyncadd [#allocation9], 4294965248 }
  0x1b   :  { %1109 = dma.done.wait [#allocation12], 1024  }
  0x1c   :  { %1110 = vsyncadd [#allocation12], 4294966272  ;;  %v878_v0 = vld [vmem:[#allocation5 + $0x38] sm:$0xff]  ;;  %v877_v2 = vld [vmem:[#allocation5 + $0x30] sm:$0xff]  ;;  %s1123_s12 = smov [#allocation13]  }
  0x1d   :  { %v886_v1 = vld [vmem:[#allocation5 + $0x78] sm:$0xff]  ;;  %277 = vmatpush.bf16.msra.mxu0 %v878_v0  ;;  %v885_v3 = vld [vmem:[#allocation5 + $0x70] sm:$0xff]  ;;  %v876_v4 = vld [vmem:[#allocation5 + $0x28] sm:$0xff]  ;;  %s651_s13 = sshll.u32 %s1123_s12, 4  ;;  %s652_s13 = int_to_ptr.vmem [resolvable:$true] %s651_s13 }
  0x1e   :  { %291 = vmatpush.bf16.msra.mxu1 %v886_v1  ;;  %v884_v5 = vld [vmem:[#allocation5 + $0x68] sm:$0xff]  ;;  %v894_v6 = vld [vmem:[#allocation7 + $0x38] sm:$0xff]  ;;  %v893_v7 = vld [vmem:[#allocation7 + $0x30] sm:$0xff] }
  0x1f   :  { %376 = vmatpush.bf16.msra.mxu2 %v894_v6  ;;  %v875_v8 = vld [vmem:[#allocation5 + $0x20] sm:$0xff]  ;;  %v892_v10 = vld [vmem:[#allocation7 + $0x28] sm:$0xff]  ;;  %v874_v11 = vld [vmem:[#allocation5 + $0x18] sm:$0xff] }
  0x20   :  { %v883_v9 = vld [vmem:[#allocation5 + $0x60] sm:$0xff]  ;;  %v882_v12 = vld [vmem:[#allocation5 + $0x58] sm:$0xff]  ;;  %v873_v14 = vld [vmem:[#allocation5 + $0x10] sm:$0xff] }
  0x21   :  { %278 = vmatpush.bf16.msra.mxu0 %v877_v2  ;;  %v891_v13 = vld [vmem:[#allocation7 + $0x20] sm:$0xff]  ;;  %v881_v15 = vld [vmem:[#allocation5 + $0x50] sm:$0xff]  ;;  %v872_v16 = vld [vmem:[#allocation5 + $0x8] sm:$0xff] }
  0x22   :  { %292 = vmatpush.bf16.msra.mxu1 %v885_v3  ;;  %v880_v17 = vld [vmem:[#allocation5 + $0x48] sm:$0xff]  ;;  %v871_v18 = vld [vmem:[#allocation5] sm:$0xff]  ;;  %v671_v20 = vld [vmem:[#allocation2] sm:$0xf] }
  0x23   :  { %377 = vmatpush.bf16.msra.mxu2 %v893_v7  ;;  %v879_v19 = vld [vmem:[#allocation5 + $0x40] sm:$0xff]  ;;  %v870_v21 = vld [vmem:[#allocation2 + $0x4] sm:$0xf0]  ;;  %v869_v22 = vld [vmem:[#allocation2 + $0x4] sm:$0xf] }
  0x24   :  { %v673_v23 = vld [vmem:[#allocation2 + $0x8] sm:$0xf0]  ;;  %v672_v24 = vor.u32 %v870_v21, %v671_v20  ;;  %v889_v27 = vld [vmem:[#allocation7 + $0x10] sm:$0xff]  ;;  %v888_v28 = vld [vmem:[#allocation7 + $0x8] sm:$0xff] }
  0x25   :  { %279 = vmatpush.bf16.msra.mxu0 %v876_v4  ;;  %v676_v25 = vor.u32 %v869_v22, %v673_v23  ;;  %v890_v26 = vld [vmem:[#allocation7 + $0x18] sm:$0xff]  ;;  %v887_v29 = vld [vmem:[#allocation7] sm:$0xff]  ;;  %v901_v31 = vld [vmem:[#allocation8 + $0x30] sm:$0xff] }
  0x26   :  { %293 = vmatpush.bf16.msra.mxu1 %v884_v5  ;;  %v902_v30 = vld [vmem:[#allocation8 + $0x38] sm:$0xff]  ;;  %v900_v32 = vld [vmem:[#allocation8 + $0x28] sm:$0xff]  ;;  %v899_v33 = vld [vmem:[#allocation8 + $0x20] sm:$0xff] }
  0x27   :  { %378 = vmatpush.bf16.msra.mxu2 %v892_v10  ;;  %461 = vmatpush.bf16.msra.mxu3 %v902_v30  ;;  %v930_v36 = vld [vmem:[%s1243_s2] ss:$0 sm:$0xff]  ;;  %v898_v46 = vld [vmem:[#allocation8 + $0x18] sm:$0xff]  ;;  %v896_v48 = vld [vmem:[#allocation8 + $0x8] sm:$0xff] }
  0x28   :  { %v897_v47 = vld [vmem:[#allocation8 + $0x10] sm:$0xff]  ;;  %v895_v49 = vld [vmem:[#allocation8] sm:$0xff]  ;;  %v910_v50 = vld [vmem:[#allocation10 + $0x38] sm:$0xff] }
  0x29   :  { %280 = vmatpush.bf16.msra.mxu0 %v875_v8  ;;  %v909_v51 = vld [vmem:[#allocation10 + $0x30] sm:$0xff]  ;;  %v908_v52 = vld [vmem:[#allocation10 + $0x28] sm:$0xff]  ;;  %v907_v53 = vld [vmem:[#allocation10 + $0x20] sm:$0xff] }
  0x2a   :  { %294 = vmatpush.bf16.msra.mxu1 %v883_v9  ;;  %v931_v55 = vld [vmem:[%s1245_s4] ss:$0 sm:$0xff]  ;;  %v906_v62 = vld [vmem:[#allocation10 + $0x18] sm:$0xff]  ;;  %v904_v0 = vld [vmem:[#allocation10 + $0x8] sm:$0xff] }
  0x2b   :  { %379 = vmatpush.bf16.msra.mxu2 %v891_v13  ;;  %462 = vmatpush.bf16.msra.mxu3 %v901_v31  ;;  %v905_v63 = vld [vmem:[#allocation10 + $0x10] sm:$0xff]  ;;  %v903_v1 = vld [vmem:[#allocation10] sm:$0xff]  ;;  %v918_v2 = vld [vmem:[#allocation11 + $0x38] sm:$0xff] }
  0x2c   :  { %v917_v3 = vld [vmem:[#allocation11 + $0x30] sm:$0xff]  ;;  %v916_v4 = vld [vmem:[#allocation11 + $0x28] sm:$0xff]  ;;  %v915_v5 = vld [vmem:[#allocation11 + $0x20] sm:$0xff] }
  0x2d   :  { %281 = vmatpush.bf16.msra.mxu0 %v874_v11  ;;  %v932_v7 = vld [vmem:[%s1247_s6] ss:$0 sm:$0xff] }
  0x2e   :  { %295 = vmatpush.bf16.msra.mxu1 %v882_v12 }
  0x2f   :  { %380 = vmatpush.bf16.msra.mxu2 %v890_v26  ;;  %463 = vmatpush.bf16.msra.mxu3 %v900_v32  ;;  %v934_v26 = vld [vmem:[%s1251_s10] ss:$0 sm:$0xff] }
  0x31   :  { %282 = vmatpush.bf16.msra.mxu0 %v873_v14  ;;  %v914_v14 = vld [vmem:[#allocation11 + $0x18] sm:$0xff] }
  0x32   :  { %296 = vmatpush.bf16.msra.mxu1 %v881_v15  ;;  %v913_v15 = vld [vmem:[#allocation11 + $0x10] sm:$0xff] }
  0x33   :  { %381 = vmatpush.bf16.msra.mxu2 %v889_v27  ;;  %464 = vmatpush.bf16.msra.mxu3 %v899_v33 }
  0x35   :  { %283 = vmatpush.bf16.msra.mxu0 %v872_v16  ;;  %v912_v16 = vld [vmem:[#allocation11 + $0x8] sm:$0xff] }
  0x36   :  { %297 = vmatpush.bf16.msra.mxu1 %v880_v17  ;;  %v911_v17 = vld [vmem:[#allocation11] sm:$0xff] }
  0x37   :  { %382 = vmatpush.bf16.msra.mxu2 %v888_v28  ;;  %465 = vmatpush.bf16.msra.mxu3 %v898_v46 }
  0x39   :  { %284 = vmatpush.bf16.msra.mxu0 %v871_v18 }
  0x3a   :  { %298 = vmatpush.bf16.msra.mxu1 %v879_v19  ;;  %v933_v19 = vld [vmem:[%s1249_s8] ss:$0 sm:$0xff]  ;;  %s653_s8 = sshll.u32 %s1252_s11, 4  ;;  %s654_s8 = int_to_ptr.hbm [resolvable:$true] %s653_s8 }
  0x3b   :  { %383 = vmatpush.bf16.msra.mxu2 %v887_v29  ;;  %466 = vmatpush.bf16.msra.mxu3 %v897_v47 }
  0x3c   :  { %285 = vmatmul.bf16.vlgmr.msra.gmra.mxu0 %v672_v24 }
  0x3d   :  { %299 = vmatmul.bf16.vlgmr.msra.gmra.mxu1 %v676_v25  ;;  %546 = vmatpush.bf16.msrb.mxu0 %v910_v50 }
  0x3e   :  { %631 = vmatpush.bf16.msrb.mxu1 %v918_v2 }
  0x3f   :  { %467 = vmatpush.bf16.msra.mxu3 %v896_v48 }
  0x41   :  { %547 = vmatpush.bf16.msrb.mxu0 %v909_v51 }
  0x42   :  { %632 = vmatpush.bf16.msrb.mxu1 %v917_v3 }
  0x43   :  { %468 = vmatpush.bf16.msra.mxu3 %v895_v49 }
  0x45   :  { %548 = vmatpush.bf16.msrb.mxu0 %v908_v52 }
  0x46   :  { %633 = vmatpush.bf16.msrb.mxu1 %v916_v4 }
  0x49   :  { %549 = vmatpush.bf16.msrb.mxu0 %v907_v53 }
  0x4a   :  { %634 = vmatpush.bf16.msrb.mxu1 %v915_v5 }
  0x4d   :  { %550 = vmatpush.bf16.msrb.mxu0 %v906_v62 }
  0x4e   :  { %635 = vmatpush.bf16.msrb.mxu1 %v914_v14 }
  0x51   :  { %551 = vmatpush.bf16.msrb.mxu0 %v905_v63 }
  0x52   :  { %636 = vmatpush.bf16.msrb.mxu1 %v913_v15 }
  0x55   :  { %552 = vmatpush.bf16.msrb.mxu0 %v904_v0 }
  0x56   :  { %637 = vmatpush.bf16.msrb.mxu1 %v912_v16 }
  0x59   :  { %553 = vmatpush.bf16.msrb.mxu0 %v903_v1 }
  0x5a   :  { %638 = vmatpush.bf16.msrb.mxu1 %v911_v17 }
  0xb9   :  { %v286_v34 = vpop.f32.mrf.mxu0 }
  0xba   :  { %v300_v35 = vpop.f32.mrf.mxu1  ;;  %v287_v37 = vadd.f32 %v930_v36, %v286_v34 }
  0xbc   :  { %v301_v39 = vadd.f32 %v300_v35, %v287_v37 }
  0xbe   :  { %v305_v43 = vmax.f32 %v301_v39, 0.0 }
  0xc1   :  { %v288_v38 = vpop.f32.mrf.mxu0 }
  0xc2   :  { %v289_v40 = vadd.f32 %v930_v36, %v288_v38  ;;  %v302_v41 = vpop.f32.mrf.mxu1 }
  0xc4   :  { %v303_v42 = vadd.f32 %v302_v41, %v289_v40 }
  0xc6   :  { %v306_v44 = vmax.f32 %v303_v42, 0.0 }
  0xc8   :  { %v307_v45 = vpack.c.bf16 %v306_v44, %v305_v43 }
  0xca   :  { %384 = vmatmul.bf16.vlgmr.msra.gmra.mxu2 %v307_v45 }
 0x14d   :  { %v385_v54 = vpop.f32.mrf.mxu2 }
 0x14e   :  { %v386_v56 = vadd.f32 %v931_v55, %v385_v54 }
 0x150   :  { %v390_v59 = vmax.f32 %v386_v56, 0.0 }
 0x155   :  { %v387_v57 = vpop.f32.mrf.mxu2 }
 0x156   :  { %v388_v58 = vadd.f32 %v931_v55, %v387_v57 }
 0x158   :  { %v391_v60 = vmax.f32 %v388_v58, 0.0 }
 0x15a   :  { %v392_v61 = vpack.c.bf16 %v391_v60, %v390_v59 }
 0x15c   :  { %469 = vmatmul.bf16.vlgmr.msra.gmra.mxu3 %v392_v61 }
 0x1df   :  { %v470_v6 = vpop.f32.mrf.mxu3 }
 0x1e0   :  { %v471_v8 = vadd.f32 %v932_v7, %v470_v6 }
 0x1e2   :  { %v475_v11 = vmax.f32 %v471_v8, 0.0 }
 0x1e7   :  { %v472_v9 = vpop.f32.mrf.mxu3 }
 0x1e8   :  { %v473_v10 = vadd.f32 %v932_v7, %v472_v9 }
 0x1ea   :  { %v476_v12 = vmax.f32 %v473_v10, 0.0 }
 0x1ec   :  { %v477_v13 = vpack.c.bf16 %v476_v12, %v475_v11 }
 0x1ee   :  { %554 = vmatmul.bf16.vlgmr.msrb.gmra.mxu0 %v477_v13 }
 0x26b   :  { %v555_v18 = vpop.f32.mrf.mxu0 }
 0x26c   :  { %v556_v20 = vadd.f32 %v933_v19, %v555_v18 }
 0x26e   :  { %v560_v23 = vmax.f32 %v556_v20, 0.0 }
 0x273   :  { %v557_v21 = vpop.f32.mrf.mxu0 }
 0x274   :  { %v558_v22 = vadd.f32 %v933_v19, %v557_v21 }
 0x276   :  { %v561_v24 = vmax.f32 %v558_v22, 0.0 }
 0x278   :  { %v562_v25 = vpack.c.bf16 %v561_v24, %v560_v23 }
 0x27a   :  { %639 = vmatmul.bf16.vlgmr.msrb.gmra.mxu1 %v562_v25 }
 0x2f7   :  { %v640_v27 = vpop.f32.mrf.mxu1 }
 0x2f8   :  { %v641_v28 = vadd.f32 %v934_v26, %v640_v27 }
 0x2fa   :  { %645 = vst [vmem:[#allocation13] sm:$0xff] %v641_v28 }
 0x2ff   :  { %v642_v29 = vpop.f32.mrf.mxu1 }
 0x300   :  { %v643_v30 = vadd.f32 %v934_v26, %v642_v29 }
 0x302   :  { %646 = vst [vmem:[#allocation13 + $0x8] sm:$0xff] %v643_v30 }
 0x303   :  { %659 = dma.vmem_to_hbm [thread:$0]  %s652_s13, 256, %s654_s8, [#allocation4], %s1118_s16, %s1118_s16, %s1119_s17  }
 0x304   :  { %1111 = dma.done.wait [#allocation4], 256  }
 0x305   :  { %1112 = vsyncadd [#allocation4], 4294967040 }
 0x306   :  { %664 = vsyncpa [#allocation3], 1 }
 0x307   :  { %665 = vsyncpa [#allocation6], 1 }
 0x308   :  { %666 = vsyncpa [#allocation9], 1 }
 0x309   :  { %667 = vsyncpa [#allocation12], 1 }
 0x30a   :  { %668 = vsyncpa [#allocation4], 1 }

</bundles_post_ra>
